<compile_context>
chip_gen: v5e
topology: v5e:2x2
jax: 0.10.0
libtpu: 0.0.40
codegen_flags: <defaults>
</compile_context>

<pallas_src>
import jax
import jax.numpy as jnp
from jax import lax
from jax.experimental import pallas as pl
from jax.experimental.pallas import tpu as pltpu


def _corr_kernel(x_ref, t_ref, o_ref):
    # x_ref: (Bblk, M, D), t_ref: (Bblk, N, D), o_ref: (Bblk, M, N)
    xf = x_ref[...].astype(jnp.float32)
    tf = t_ref[...].astype(jnp.float32)

    # Row norms in f32; rsqrt lands on the EUP slot (co-issues with VPU/MXU).
    inv_x = lax.rsqrt(jnp.sum(xf * xf, axis=-1, keepdims=True))   # (Bblk, M, 1)
    inv_t = lax.rsqrt(jnp.sum(tf * tf, axis=-1, keepdims=True))   # (Bblk, N, 1)

    # Pre-normalized operands, cast back to the input dtype so bf16 inputs
    # hit the full-rate MXU path with f32 accumulation.
    xn = (xf * inv_x).astype(x_ref.dtype)
    tn = (tf * inv_t).astype(t_ref.dtype)

    # corr = Xn @ Tn^T, batched over the Bblk axis; contraction over D.
    corr = jnp.einsum('bmd,bnd->bmn', xn, tn,
                      preferred_element_type=jnp.float32)          # (Bblk, M, N)
    o_ref[...] = corr.astype(o_ref.dtype)


def _choose_bblk(B, M, N, D, in_itemsize, out_itemsize,
                 budget_bytes=12 * 1024 * 1024):
    """Largest divisor of B whose double-buffered block residency fits the budget."""
    per_b = 2 * ((M * D + N * D) * in_itemsize + M * N * out_itemsize)
    best = 1
    for cand in range(1, B + 1):
        if B % cand == 0 and cand * per_b <= budget_bytes:
            best = cand
    return best


def corr_layer(X, T):
    """X: (B, M, D), T: (B, N, D)  ->  (B, M, N) correlation map."""
    B, M, D = X.shape
    Bt, N, Dt = T.shape
    assert B == Bt and D == Dt, "batch / feature dims of X and T must match"

    out_dtype = jnp.promote_types(X.dtype, T.dtype)
    X = X.astype(out_dtype)
    T = T.astype(out_dtype)

    bblk = _choose_bblk(B, M, N, D,
                        jnp.dtype(out_dtype).itemsize,
                        jnp.dtype(out_dtype).itemsize)
    nb = B // bblk
    # TODO(synk): for very large M/N a further (M, N) tiling grid would be
    # needed to stay within v7x's 64 MiB VMEM; the ConvCA shapes fit as-is.

    out = pl.pallas_call(
        _corr_kernel,
        out_shape=jax.ShapeDtypeStruct((B, M, N), out_dtype),
        grid_spec=pltpu.PrefetchScalarGridSpec(
            num_scalar_prefetch=0,
            grid=(nb,),
            in_specs=[
                pl.BlockSpec((bblk, M, D), lambda i: (i, 0, 0)),
                pl.BlockSpec((bblk, N, D), lambda i: (i, 0, 0)),
            ],
            out_specs=pl.BlockSpec((bblk, M, N), lambda i: (i, 0, 0)),
        ),
        compiler_params=pltpu.CompilerParams(
            dimension_semantics=("parallel",),      # shard batch blocks across TCs
            vmem_limit_bytes=32 * 1024 * 1024,      # safe on v5e/v6e/v7x
        ),
    )(X, T)
    return out


def _corr_layer_ref(X, T):
    """Pure-JAX reference mirroring the PyTorch forward."""
    Ts = jnp.swapaxes(T, -1, -2)                           # (B, D, N)
    corr_xt = jnp.matmul(X, Ts)                            # (B, M, N)
    corr_xx = jnp.sum(jnp.square(X), -1, keepdims=True)    # (B, M, 1)
    corr_tt = jnp.sum(jnp.square(Ts), -2, keepdims=True)   # (B, 1, N)
    return corr_xt / (jnp.sqrt(corr_xx) * jnp.sqrt(corr_tt))


if __name__ == "__main__":
    # CorrLayer has no learnable parameters, only inputs.
    key = jax.random.PRNGKey(0)
    kx, kt, kx2, kt2 = jax.random.split(key, 4)

    # f32 path
    B, M, N, D = 2, 8, 8, 32
    X = jax.random.normal(kx, (B, M, D), dtype=jnp.float32)
    T = jax.random.normal(kt, (B, N, D), dtype=jnp.float32)
    out = jax.block_until_ready(corr_layer(X, T))
    ref = _corr_layer_ref(X, T)
    assert out.shape == (B, M, N)
    assert jnp.allclose(out, ref, atol=1e-5, rtol=1e-5), "f32 mismatch vs reference"

    # bf16 path (operands stay bf16 into the MXU; output follows input dtype)
    Xb = X.astype(jnp.bfloat16)
    Tb = T.astype(jnp.bfloat16)
    out_b = jax.block_until_ready(corr_layer(Xb, Tb))
    ref_b = _corr_layer_ref(Xb.astype(jnp.float32), Tb.astype(jnp.float32))
    assert out_b.dtype == jnp.bfloat16 and out_b.shape == (B, M, N)
    assert jnp.allclose(out_b.astype(jnp.float32), ref_b, atol=5e-2, rtol=5e-2), \
        "bf16 mismatch vs reference"

    # ConvCA-like shape (templates along N), non-power-of-two batch
    B2, M2, N2, D2 = 3, 8, 40, 64
    X2 = jax.random.normal(kx2, (B2, M2, D2), dtype=jnp.float32)
    T2 = jax.random.normal(kt2, (B2, N2, D2), dtype=jnp.float32)
    out2 = jax.block_until_ready(corr_layer(X2, T2))
    ref2 = _corr_layer_ref(X2, T2)
    assert out2.shape == (B2, M2, N2)
    assert jnp.allclose(out2, ref2, atol=1e-5, rtol=1e-5), "f32 mismatch (shape 2)"

    print("KERNEL_OK")
</pallas_src>

<mosaic_0001>
module attributes {stable_mosaic.version = 11 : i64} {
  func.func @_corr_kernel(%arg0: i32, %arg1: memref<2x8x32xf32, #tpu.memory_space<vmem>>, %arg2: memref<2x8x32xf32, #tpu.memory_space<vmem>>, %arg3: memref<2x8x8xf32, #tpu.memory_space<vmem>>) attributes {dimension_semantics = [#tpu.dimension_semantics<parallel>], iteration_bounds = array<i64: 1>, scalar_prefetch = 0 : i64, scratch_operands = 0 : i64, tpu.core_type = #tpu.core_type<tc>, window_params = [{transform_indices = @transform_0, window_bounds = array<i64: 2, 8, 32>}, {transform_indices = @transform_1, window_bounds = array<i64: 2, 8, 32>}, {transform_indices = @transform_2, window_bounds = array<i64: 2, 8, 8>}]} {
    %c0 = arith.constant 0 : index
    %c0_0 = arith.constant 0 : index
    %c0_1 = arith.constant 0 : index
    %0 = vector.load %arg1[%c0, %c0_0, %c0_1] : memref<2x8x32xf32, #tpu.memory_space<vmem>>, vector<2x8x32xf32>
    %c0_2 = arith.constant 0 : index
    %c0_3 = arith.constant 0 : index
    %c0_4 = arith.constant 0 : index
    %1 = vector.load %arg2[%c0_2, %c0_3, %c0_4] : memref<2x8x32xf32, #tpu.memory_space<vmem>>, vector<2x8x32xf32>
    %2 = arith.mulf %0, %0 : vector<2x8x32xf32>
    %cst = arith.constant dense<0.000000e+00> : vector<2x8xf32>
    %3 = vector.multi_reduction <add>, %2, %cst [2] : vector<2x8x32xf32> to vector<2x8xf32>
    %4 = vector.shape_cast %3 : vector<2x8xf32> to vector<2x8x1xf32>
    %5 = math.rsqrt %4 : vector<2x8x1xf32>
    %6 = arith.mulf %1, %1 : vector<2x8x32xf32>
    %cst_5 = arith.constant dense<0.000000e+00> : vector<2x8xf32>
    %7 = vector.multi_reduction <add>, %6, %cst_5 [2] : vector<2x8x32xf32> to vector<2x8xf32>
    %8 = vector.shape_cast %7 : vector<2x8xf32> to vector<2x8x1xf32>
    %9 = math.rsqrt %8 : vector<2x8x1xf32>
    %10 = vector.broadcast %5 : vector<2x8x1xf32> to vector<2x8x32xf32>
    %11 = arith.mulf %0, %10 : vector<2x8x32xf32>
    %12 = vector.broadcast %9 : vector<2x8x1xf32> to vector<2x8x32xf32>
    %13 = arith.mulf %1, %12 : vector<2x8x32xf32>
    "tpu.trace_start"() <{level = 10 : i32, message = "bmd,bnd->bmn"}> : () -> ()
    %cst_6 = arith.constant dense<0.000000e+00> : vector<2x8x8xf32>
    %14 = tpu.matmul %11, %13, %cst_6 {dimension_numbers = #tpu.dot_dimension_numbers<[2], [2], [1], [1], [0, 0, 0, 1, 1, 1], [0], [0]>} : vector<2x8x32xf32>, vector<2x8x32xf32>, vector<2x8x8xf32> -> vector<2x8x8xf32>
    "tpu.trace_stop"() : () -> ()
    %c0_7 = arith.constant 0 : index
    %c0_8 = arith.constant 0 : index
    %c0_9 = arith.constant 0 : index
    %15 = vector.load %arg3[%c0_7, %c0_8, %c0_9] : memref<2x8x8xf32, #tpu.memory_space<vmem>>, vector<2x8x8xf32>
    tpu.vector_store %arg3[%c0_7, %c0_8, %c0_9], %14 {strides = array<i32>} : memref<2x8x8xf32, #tpu.memory_space<vmem>>, vector<2x8x8xf32>,
    return
  }
  func.func @transform_0(%arg0: i32) -> (i32, i32, i32) {
    %c0_i32 = arith.constant 0 : i32
    %c0_i32_0 = arith.constant 0 : i32
    %c0_i32_1 = arith.constant 0 : i32
    return %arg0, %c0_i32, %c0_i32_0 : i32, i32, i32
  }
  func.func @transform_1(%arg0: i32) -> (i32, i32, i32) {
    %c0_i32 = arith.constant 0 : i32
    %c0_i32_0 = arith.constant 0 : i32
    %c0_i32_1 = arith.constant 0 : i32
    return %arg0, %c0_i32, %c0_i32_0 : i32, i32, i32
  }
  func.func @transform_2(%arg0: i32) -> (i32, i32, i32) {
    %c0_i32 = arith.constant 0 : i32
    %c0_i32_0 = arith.constant 0 : i32
    %c0_i32_1 = arith.constant 0 : i32
    return %arg0, %c0_i32, %c0_i32_0 : i32, i32, i32
  }
}

</mosaic_0001>

<bundles_post_ra>
// kernel: tpu_custom_call.1
= control target key start
LH: loop header
LB: loop body
LE: loop exit
PB: predicated region body
PF: predicated region fallthrough
CT: control target
= control target key end

     0   :  { %7 = vsyncpa [#allocation3], 0  ;;  %s335_s0 = inlined_call_operand.hbm [shape: f32[2,8,32], index: 0, kind: input, shape index: {}]   ;;  %s336_s1 = inlined_call_operand.hbm [shape: f32[2,8,32], index: 1, kind: input, shape index: {}]   ;;  %s337_s2 = inlined_call_operand.hbm [shape: f32[2,8,8], index: 2, kind: output, shape index: {}]  }
   0x1   :  { %8 = vsyncpa [#allocation6], 0 }
   0x2   :  { %9 = vsyncpa [#allocation4], 0  ;;  %s14_s11 = sshll.u32 %s335_s0, 4  ;;  %s279_s12 = smov [#allocation2]   ;;  %s15_s11 = int_to_ptr.hbm [resolvable:$true] %s14_s11 }
   0x3   :  { %s16_s13 = sshll.u32 %s279_s12, 4  ;;  %s27_s16 = sshll.u32 %s336_s1, 4  ;;  %s17_s13 = int_to_ptr.vmem [resolvable:$true] %s16_s13  ;;  %s28_s16 = int_to_ptr.hbm [resolvable:$true] %s27_s16 }
   0x4   :  { %s280_s17 = smov 128   ;;  %s281_s18 = smov 8  }
   0x5   :  { %22 = dma.hbm_to_vmem [thread:$0]  %s15_s11, 256, %s17_s13, [#allocation3], %s280_s17, %s280_s17, %s281_s18  }
   0x6   :  { %s282_s19 = smov [#allocation5]  }
   0x7   :  { %s29_s20 = sshll.u32 %s282_s19, 4  ;;  %s30_s20 = int_to_ptr.vmem [resolvable:$true] %s29_s20 }
   0x8   :  { %35 = dma.hbm_to_vmem [thread:$0]  %s28_s16, 256, %s30_s20, [#allocation6], %s280_s17, %s280_s17, %s281_s18  }
   0x9   :  { %273 = dma.done.wait [#allocation3], 256  }
   0xa   :  { %274 = vsyncadd [#allocation3], 4294967040 }
   0xb   :  { %275 = dma.done.wait [#allocation6], 256  }
   0xc   :  { %276 = vsyncadd [#allocation6], 4294967040  ;;  %v46_v0 = vld [vmem:[#allocation5] sm:$0xff]  ;;  %vm50_vm0 = vcmask 261120   ;;  %v44_v1 = vld [vmem:[#allocation2] sm:$0xff]  ;;  %vm161_vm13 = vcmask 64512  }
   0xd   :  { %v77_v2 = vmul.f32 %v46_v0, %v46_v0  ;;  %v48_v3 = vmul.f32 %v44_v1, %v44_v1  ;;  %v311_v4 = vld [vmem:[#allocation5 + $0x8] sm:$0xff]  ;;  %v313_v5 = vld [vmem:[#allocation2 + $0x8] sm:$0xff]  ;;  %s283_s0 = smov [#allocation7]   ;;  %s170_s23 = sshll.u32 %s337_s2, 4  ;;  %s171_s23 = int_to_ptr.hbm [resolvable:$true] %s170_s23 }
   0xe   :  { %v78_v8 = vmul.f32 %v311_v4, %v311_v4  ;;  %v49_v9 = vmul.f32 %v313_v5, %v313_v5  ;;  %s168_s1 = sshll.u32 %s283_s0, 4  ;;  %s169_s1 = int_to_ptr.vmem [resolvable:$true] %s168_s1 }
   0xf   :  { %v79_v6 = vsel %vm50_vm0, %v77_v2, 0.0  ;;  %v51_v7 = vsel %vm50_vm0, %v48_v3, 0.0 }
  0x10   :  { %80 = vadd.xlane.f32.xlu0 %v79_v6  ;;  %52 = vadd.xlane.f32.xlu1 %v51_v7  ;;  %v82_v10 = vsel %vm50_vm0, %v78_v8, 0.0  ;;  %v54_v11 = vsel %vm50_vm0, %v49_v9, 0.0 }
  0x18   :  { %83 = vadd.xlane.f32.xlu0 %v82_v10  ;;  %55 = vadd.xlane.f32.xlu1 %v54_v11 }
  0x83   :  { %v81_v12 = vpop.xlane.xlu0 %80  ;;  %v53_v13 = vpop.xlane.xlu1 %52 }
  0x84   :  { %193 = vrsqrt.f32 %v81_v12  ;;  %vm91_vm3 = vweird.f32 %v81_v12  ;;  %vm63_vm5 = vweird.f32 %v53_v13 }
  0x85   :  { %195 = vrsqrt.f32 %v53_v13 }
  0x8a   :  { %v194_v14 = vpop.eup %193 }
  0x8b   :  { %v196_v15 = vpop.eup %195  ;;  %v86_v16 = vmul.f32 %v194_v14, %v81_v12  ;;  %v84_v17 = vpop.xlane.xlu0 %83  ;;  %vm92_vm1 = vweird.f32 %v194_v14 }
  0x8c   :  { %v56_v18 = vpop.xlane.xlu1 %55  ;;  %v58_v19 = vmul.f32 %v196_v15, %v53_v13  ;;  %197 = vrsqrt.f32 %v84_v17  ;;  %vm64_vm2 = vweird.f32 %v196_v15  ;;  %vm93_vm4 = vmor %vm91_vm3, %vm92_vm1  ;;  %vm101_vm9 = vweird.f32 %v84_v17 }
  0x8d   :  { %v87_v20 = vmul.f32 %v194_v14, %v86_v16  ;;  %199 = vrsqrt.f32 %v56_v18  ;;  %vm65_vm6 = vmor %vm63_vm5, %vm64_vm2  ;;  %vm73_vm11 = vweird.f32 %v56_v18 }
  0x8e   :  { %v59_v21 = vmul.f32 %v196_v15, %v58_v19 }
  0x8f   :  { %v88_v22 = vmul.f32 0.5, %v87_v20 }
  0x90   :  { %v60_v23 = vmul.f32 0.5, %v59_v21 }
  0x91   :  { %v89_v24 = vsub.f32 1.5, %v88_v22 }
  0x92   :  { %v198_v25 = vpop.eup %197  ;;  %v61_v26 = vsub.f32 1.5, %v60_v23 }
  0x93   :  { %v200_v27 = vpop.eup %199  ;;  %v96_v28 = vmul.f32 %v198_v25, %v84_v17  ;;  %v90_v29 = vmul.f32 %v194_v14, %v89_v24  ;;  %vm102_vm7 = vweird.f32 %v198_v25 }
  0x94   :  { %v62_v30 = vmul.f32 %v196_v15, %v61_v26  ;;  %v68_v31 = vmul.f32 %v200_v27, %v56_v18  ;;  %vm74_vm8 = vweird.f32 %v200_v27  ;;  %vm103_vm10 = vmor %vm101_vm9, %vm102_vm7 }
  0x95   :  { %v97_v32 = vmul.f32 %v198_v25, %v96_v28  ;;  %v94_v33 = vsel %vm93_vm4, %v194_v14, %v90_v29  ;;  %vm75_vm12 = vmor %vm73_vm11, %vm74_vm8 }
  0x96   :  { %v69_v34 = vmul.f32 %v200_v27, %v68_v31  ;;  %v107_v35 = vmul.f32 %v94_v33, %v46_v0  ;;  %v66_v36 = vsel %vm65_vm6, %v196_v15, %v62_v30 }
  0x97   :  { %v98_v37 = vmul.f32 0.5, %v97_v32  ;;  %v105_v40 = vmul.f32 %v66_v36, %v44_v1 }
  0x98   :  { %v70_v38 = vmul.f32 0.5, %v69_v34  ;;  %184 = vmatpush.xpose.msk.msra.mxu0 %vm50_vm0, %v107_v35 }
  0x99   :  { %v99_v39 = vsub.f32 1.5, %v98_v37 }
  0x9a   :  { %v71_v41 = vsub.f32 1.5, %v70_v38 }
  0x9b   :  { %v100_v42 = vmul.f32 %v198_v25, %v99_v39  ;;  %185 = vmatmul.msk.f32.vlgmr.msra.gmra.mxu0 %vm50_vm0, %v105_v40 }
  0x9c   :  { %v72_v43 = vmul.f32 %v200_v27, %v71_v41 }
  0x9d   :  { %v104_v44 = vsel %vm103_vm10, %v198_v25, %v100_v42 }
  0x9e   :  { %v108_v45 = vmul.f32 %v104_v44, %v311_v4  ;;  %v76_v46 = vsel %vm75_vm12, %v200_v27, %v72_v43 }
  0x9f   :  { %v106_v47 = vmul.f32 %v76_v46, %v313_v5 }
  0xa0   :  { %186 = vmatpush.xpose.msk.msra.mxu1 %vm50_vm0, %v108_v45 }
  0xa3   :  { %187 = vmatmul.msk.f32.vlgmr.msra.gmra.mxu1 %vm50_vm0, %v106_v47 }
 0x118   :  { %v132_v48 = vpop.f32.mrf.mxu0 }
 0x119   :  { %162 = vst.msk [vmem:[#allocation7] sm:$0xff] %vm161_vm13, %v132_v48 }
 0x120   :  { %v158_v49 = vpop.f32.mrf.mxu1 }
 0x121   :  { %163 = vst.msk [vmem:[#allocation7 + $0x8] sm:$0xff] %vm161_vm13, %v158_v49 }
 0x122   :  { %176 = dma.vmem_to_hbm [thread:$0]  %s169_s1, 256, %s171_s23, [#allocation4], %s280_s17, %s280_s17, %s281_s18  }
 0x123   :  { %277 = dma.done.wait [#allocation4], 256  }
 0x124   :  { %278 = vsyncadd [#allocation4], 4294967040 }
 0x125   :  { %181 = vsyncpa [#allocation3], 1 }
 0x126   :  { %182 = vsyncpa [#allocation6], 1 }
 0x127   :  { %183 = vsyncpa [#allocation4], 1 }

</bundles_post_ra>
